<compile_context>
chip_gen: v7x
topology: tpu7x:2x2x1
jax: 0.10.0
libtpu: 0.0.40
codegen_flags: <defaults>
</compile_context>

<pallas_src>
import math
from functools import partial

import numpy as np
import jax
import jax.numpy as jnp
from jax import lax
from jax.experimental import pallas as pl
from jax.experimental.pallas import tpu as pltpu


def _round_up(x, m):
    return ((x + m - 1) // m) * m


def _proj_ln_kernel(p_ref, w_ref, cb_ref, g_ref, b_ref, o_ref, *, d_true, eps):
    # p_ref:  (tile_n, K_pad) im2col rows (K padding is zero)
    # w_ref:  (K_pad, D_pad)  projection weight (zero padding)
    # cb_ref: (1, D_pad)      conv bias, f32 (zero in padded lanes)
    # g_ref / b_ref: (1, D_pad) LN gamma / beta, f32 (zero in padded lanes)
    # o_ref:  (tile_n, D_pad) lane-dense output tile
    acc = jnp.dot(p_ref[...], w_ref[...], preferred_element_type=jnp.float32)
    acc = acc + cb_ref[...]          # one VPU broadcast-add, hidden under MXU/DMA

    # LayerNorm over the true embed_dim. Invariant: padded lanes of `acc` are
    # exactly zero (zero weight columns AND zero-padded bias), so the raw lane
    # sums already cover only the true D lanes -> no iota/mask needed.
    inv_d = 1.0 / float(d_true)
    s1 = jnp.sum(acc, axis=-1, keepdims=True)
    s2 = jnp.sum(acc * acc, axis=-1, keepdims=True)
    mean = s1 * inv_d
    var = s2 * inv_d - mean * mean   # f32 accumulation; fine for post-conv acts
    norm = (acc - mean) * lax.rsqrt(var + eps)
    # gamma/beta are zero in padded lanes -> padded output lanes are 0 and get
    # sliced off in the wrapper.
    o_ref[...] = (norm * g_ref[...] + b_ref[...]).astype(o_ref.dtype)


def _choose_tiling(N, K_pad, D_pad, in_itemsize, out_itemsize, target=1024):
    """Pick (tile_n, n_pad): multiple of 8, VMEM-safe, divides N if possible,
    and keeps >= 2 grid steps when feasible (v7x has 2 TensorCores)."""
    # Rough VMEM budget: double-buffered p + out tiles + double-buffered
    # resident weight. 12 MiB keeps headroom under v5e's 16 MiB scoped default
    # (and trivially under v6e/v7x limits).
    budget = 12 * 1024 * 1024
    fixed = 2 * K_pad * D_pad * in_itemsize + 8 * D_pad * 4
    per_row = 2 * (K_pad * in_itemsize + D_pad * out_itemsize)
    max_tile = max(8, (budget - fixed) // max(per_row, 1))
    max_tile = max(8, (max_tile // 8) * 8)
    target = min(target, max_tile)

    if N % 8 == 0:
        divs = [t for t in range(8, min(target, N) + 1, 8) if N % t == 0]
        if divs:
            two_step = [t for t in divs if N // t >= 2]
            tile = max(two_step) if two_step else max(divs)
            return tile, N

    tile = max(8, (min(target, _round_up(N, 8)) // 8) * 8)
    n_pad = _round_up(N, tile)
    if n_pad // tile < 2 and tile > 8:
        tile = max(8, _round_up(-(-N // 2), 8))
        n_pad = _round_up(N, tile)
    return tile, n_pad


def overlap_patch_embed(x, conv_w, conv_b, ln_g, ln_b, *, patch_size=7, stride=4,
                        tile_n=1024, matmul_dtype=jnp.bfloat16, out_dtype=None,
                        eps=1e-5):
    """PVT OverlapPatchEmbed forward. Returns (out[B, Ho*Wo, D], Ho, Wo).

    matmul_dtype: dtype of the MXU matmul operands (p and w). bf16 by default
                  (MXU-native on all generations); LayerNorm math stays f32.
    out_dtype:    output dtype (None -> x.dtype). bf16 halves store traffic if
                  the consumer accepts it.
    """
    B, C, H, W = x.shape
    D = conv_w.shape[0]
    kh = kw = patch_size
    pad = patch_size // 2
    H_out = (H + 2 * pad - kh) // stride + 1
    W_out = (W + 2 * pad - kw) // stride + 1
    N = B * H_out * W_out
    K = kh * kw * C

    cdt = jnp.dtype(x.dtype if matmul_dtype is None else matmul_dtype)
    odt = jnp.dtype(x.dtype if out_dtype is None else out_dtype)

    # --- im2col in NHWC, K ordered (kh, kw, C); cast to the matmul dtype
    # BEFORE expansion so the 3x-sized patch matrix is materialized at the
    # narrow width. The only transpose is the cheap NCHW->NHWC one on the
    # un-expanded input.
    x_nhwc = jnp.transpose(x, (0, 2, 3, 1)).astype(cdt)
    xp = jnp.pad(x_nhwc, ((0, 0), (pad, pad), (pad, pad), (0, 0)))
    cols = [xp[:, i:i + stride * H_out:stride, j:j + stride * W_out:stride, :]
            for i in range(kh) for j in range(kw)]
    p = jnp.stack(cols, axis=3).reshape(N, K)          # [N, (kh*kw)*C], cdt

    # Conv weight [D, C, kh, kw] -> [K, D] with the same (kh, kw, C) ordering.
    w = jnp.transpose(conv_w, (2, 3, 1, 0)).reshape(K, D).astype(cdt)

    # --- alignment: K, D -> multiples of 128 for aligned MXU contraction and
    # lane-dense stores; N -> multiple of tile_n (exactly N when a divisor
    # tile exists). Padding is a single jnp.pad per operand (no scatter).
    K_pad = _round_up(K, 128)
    D_pad = _round_up(D, 128)
    tile_n, n_pad = _choose_tiling(N, K_pad, D_pad, cdt.itemsize, odt.itemsize,
                                   target=tile_n)

    p_pad = jnp.pad(p, ((0, n_pad - N), (0, K_pad - K)))
    w_pad = jnp.pad(w, ((0, K_pad - K), (0, D_pad - D)))
    cb_pad = jnp.pad(conv_b.astype(jnp.float32)[None, :], ((0, 0), (0, D_pad - D)))
    g_pad = jnp.pad(ln_g.astype(jnp.float32)[None, :], ((0, 0), (0, D_pad - D)))
    b_pad = jnp.pad(ln_b.astype(jnp.float32)[None, :], ((0, 0), (0, D_pad - D)))

    kernel = partial(_proj_ln_kernel, d_true=D, eps=eps)
    out = pl.pallas_call(
        kernel,
        out_shape=jax.ShapeDtypeStruct((n_pad, D_pad), odt),
        grid_spec=pltpu.PrefetchScalarGridSpec(
            num_scalar_prefetch=0,
            grid=(n_pad // tile_n,),
            in_specs=[
                pl.BlockSpec((tile_n, K_pad), lambda i: (i, 0)),   # patch rows
                pl.BlockSpec((K_pad, D_pad), lambda i: (0, 0)),    # weight
                pl.BlockSpec((1, D_pad), lambda i: (0, 0)),        # conv bias (f32)
                pl.BlockSpec((1, D_pad), lambda i: (0, 0)),        # LN gamma (f32)
                pl.BlockSpec((1, D_pad), lambda i: (0, 0)),        # LN beta  (f32)
            ],
            out_specs=pl.BlockSpec((tile_n, D_pad), lambda i: (i, 0)),
        ),
        compiler_params=pltpu.CompilerParams(
            dimension_semantics=("parallel",)),
    )(p_pad, w_pad, cb_pad, g_pad, b_pad)

    out = out[:N, :D].reshape(B, H_out * W_out, D)
    return out, H_out, W_out


def _reference(x, conv_w, conv_b, ln_g, ln_b, *, stride=4, pad=3, eps=1e-5):
    y = lax.conv_general_dilated(
        x, conv_w, window_strides=(stride, stride),
        padding=[(pad, pad), (pad, pad)],
        dimension_numbers=("NCHW", "OIHW", "NCHW"))
    y = y + conv_b[None, :, None, None]
    B, D, Ho, Wo = y.shape
    y = y.reshape(B, D, Ho * Wo).transpose(0, 2, 1)
    mean = y.mean(-1, keepdims=True)
    var = ((y - mean) ** 2).mean(-1, keepdims=True)
    y = (y - mean) / jnp.sqrt(var + eps) * ln_g + ln_b
    return y, Ho, Wo


if __name__ == "__main__":
    # Small shapes consistent with the module: img_size=16, patch=7, stride=4,
    # in_chans=4, embed_dim=32.
    B, C, H, W = 2, 4, 16, 16
    D, patch, stride = 32, 7, 4

    key = jax.random.PRNGKey(0)
    kx, kw_, kb = jax.random.split(key, 3)
    x = jax.random.normal(kx, (B, C, H, W), dtype=jnp.float32)

    # Weights mirroring OverlapPatchEmbed._init_weights (Conv2d: normal(0,
    # sqrt(2/fan_out)); LayerNorm: gamma=1, beta=0). The conv bias is given a
    # small nonzero value here purely to exercise the separate-bias path.
    fan_out = patch * patch * D
    conv_w = math.sqrt(2.0 / fan_out) * jax.random.normal(
        kw_, (D, C, patch, patch), dtype=jnp.float32)
    conv_b = 0.05 * jax.random.normal(kb, (D,), dtype=jnp.float32)
    ln_g = jnp.ones((D,), dtype=jnp.float32)
    ln_b = jnp.zeros((D,), dtype=jnp.float32)

    ref, Ho_r, Wo_r = _reference(x, conv_w, conv_b, ln_g, ln_b,
                                 stride=stride, pad=patch // 2)

    # 1) f32 matmul path: matches the f32 reference tightly.
    out32, Ho, Wo = overlap_patch_embed(x, conv_w, conv_b, ln_g, ln_b,
                                        patch_size=patch, stride=stride,
                                        matmul_dtype=jnp.float32)
    out32 = jax.block_until_ready(out32)
    assert (Ho, Wo) == (Ho_r, Wo_r)
    assert out32.shape == (B, Ho * Wo, D)
    np.testing.assert_allclose(np.asarray(out32), np.asarray(ref),
                               rtol=1e-4, atol=1e-4)

    # 2) default bf16 matmul path (recommended on all generations): the conv
    #    bias and all LayerNorm math stay in f32, so the only error source is
    #    the bf16 MXU operands.
    out_bf16, _, _ = overlap_patch_embed(x, conv_w, conv_b, ln_g, ln_b,
                                         patch_size=patch, stride=stride)
    out_bf16 = jax.block_until_ready(out_bf16)
    assert np.all(np.isfinite(np.asarray(out_bf16)))
    np.testing.assert_allclose(np.asarray(out_bf16), np.asarray(ref),
                               rtol=0.1, atol=0.1)

    print("KERNEL_OK")
</pallas_src>

<mosaic_0001>
module attributes {stable_mosaic.version = 11 : i64} {
  func.func @_proj_ln_kernel(%arg0: i32, %arg1: memref<16x256xf32, #tpu.memory_space<vmem>>, %arg2: memref<256x128xf32, #tpu.memory_space<vmem>>, %arg3: memref<1x128xf32, #tpu.memory_space<vmem>>, %arg4: memref<1x128xf32, #tpu.memory_space<vmem>>, %arg5: memref<1x128xf32, #tpu.memory_space<vmem>>, %arg6: memref<16x128xf32, #tpu.memory_space<vmem>>) attributes {dimension_semantics = [#tpu.dimension_semantics<parallel>], iteration_bounds = array<i64: 2>, scalar_prefetch = 0 : i64, scratch_operands = 0 : i64, tpu.core_type = #tpu.core_type<tc>, window_params = [{transform_indices = @transform_0, window_bounds = array<i64: 16, 256>}, {pipeline_mode = #tpu.pipeline_mode<synchronous>, transform_indices = @transform_1, window_bounds = array<i64: 256, 128>}, {pipeline_mode = #tpu.pipeline_mode<synchronous>, transform_indices = @transform_2, window_bounds = array<i64: 1, 128>}, {pipeline_mode = #tpu.pipeline_mode<synchronous>, transform_indices = @transform_3, window_bounds = array<i64: 1, 128>}, {pipeline_mode = #tpu.pipeline_mode<synchronous>, transform_indices = @transform_4, window_bounds = array<i64: 1, 128>}, {transform_indices = @transform_5, window_bounds = array<i64: 16, 128>}]} {
    %c0 = arith.constant 0 : index
    %c0_0 = arith.constant 0 : index
    %0 = vector.load %arg1[%c0, %c0_0] : memref<16x256xf32, #tpu.memory_space<vmem>>, vector<16x256xf32>
    %c0_1 = arith.constant 0 : index
    %c0_2 = arith.constant 0 : index
    %1 = vector.load %arg2[%c0_1, %c0_2] : memref<256x128xf32, #tpu.memory_space<vmem>>, vector<256x128xf32>
    %cst = arith.constant dense<0.000000e+00> : vector<16x128xf32>
    %2 = tpu.matmul %0, %1, %cst {dimension_numbers = #tpu.dot_dimension_numbers<[1], [0], [0], [1], [0, 0, 1, 1], [], []>} : vector<16x256xf32>, vector<256x128xf32>, vector<16x128xf32> -> vector<16x128xf32>
    %c0_3 = arith.constant 0 : index
    %c0_4 = arith.constant 0 : index
    %3 = vector.load %arg3[%c0_3, %c0_4] : memref<1x128xf32, #tpu.memory_space<vmem>>, vector<1x128xf32>
    %4 = vector.broadcast %3 : vector<1x128xf32> to vector<16x128xf32>
    %5 = arith.addf %2, %4 : vector<16x128xf32>
    %cst_5 = arith.constant dense<0.000000e+00> : vector<16xf32>
    %6 = vector.multi_reduction <add>, %5, %cst_5 [1] : vector<16x128xf32> to vector<16xf32>
    %7 = vector.shape_cast %6 : vector<16xf32> to vector<16x1xf32>
    %8 = arith.mulf %5, %5 : vector<16x128xf32>
    %cst_6 = arith.constant dense<0.000000e+00> : vector<16xf32>
    %9 = vector.multi_reduction <add>, %8, %cst_6 [1] : vector<16x128xf32> to vector<16xf32>
    %10 = vector.shape_cast %9 : vector<16xf32> to vector<16x1xf32>
    %cst_7 = arith.constant 3.125000e-02 : f32
    %11 = vector.broadcast %cst_7 : f32 to vector<16x1xf32>
    %12 = arith.mulf %7, %11 : vector<16x1xf32>
    %cst_8 = arith.constant 3.125000e-02 : f32
    %13 = vector.broadcast %cst_8 : f32 to vector<16x1xf32>
    %14 = arith.mulf %10, %13 : vector<16x1xf32>
    %15 = arith.mulf %12, %12 : vector<16x1xf32>
    %16 = arith.subf %14, %15 : vector<16x1xf32>
    %17 = vector.broadcast %12 : vector<16x1xf32> to vector<16x128xf32>
    %18 = arith.subf %5, %17 : vector<16x128xf32>
    %cst_9 = arith.constant 9.99999974E-6 : f32
    %19 = vector.broadcast %cst_9 : f32 to vector<16x1xf32>
    %20 = arith.addf %16, %19 : vector<16x1xf32>
    %21 = math.rsqrt %20 : vector<16x1xf32>
    %22 = vector.broadcast %21 : vector<16x1xf32> to vector<16x128xf32>
    %23 = arith.mulf %18, %22 : vector<16x128xf32>
    %c0_10 = arith.constant 0 : index
    %c0_11 = arith.constant 0 : index
    %24 = vector.load %arg4[%c0_10, %c0_11] : memref<1x128xf32, #tpu.memory_space<vmem>>, vector<1x128xf32>
    %25 = vector.broadcast %24 : vector<1x128xf32> to vector<16x128xf32>
    %26 = arith.mulf %23, %25 : vector<16x128xf32>
    %c0_12 = arith.constant 0 : index
    %c0_13 = arith.constant 0 : index
    %27 = vector.load %arg5[%c0_12, %c0_13] : memref<1x128xf32, #tpu.memory_space<vmem>>, vector<1x128xf32>
    %28 = vector.broadcast %27 : vector<1x128xf32> to vector<16x128xf32>
    %29 = arith.addf %26, %28 : vector<16x128xf32>
    %c0_14 = arith.constant 0 : index
    %c0_15 = arith.constant 0 : index
    %30 = vector.load %arg6[%c0_14, %c0_15] : memref<16x128xf32, #tpu.memory_space<vmem>>, vector<16x128xf32>
    tpu.vector_store %arg6[%c0_14, %c0_15], %29 {strides = array<i32>} : memref<16x128xf32, #tpu.memory_space<vmem>>, vector<16x128xf32>,
    return
  }
  func.func @transform_0(%arg0: i32) -> (i32, i32) {
    %c0_i32 = arith.constant 0 : i32
    %c0_i32_0 = arith.constant 0 : i32
    return %arg0, %c0_i32 : i32, i32
  }
  func.func @transform_1(%arg0: i32) -> (i32, i32) {
    %c0_i32 = arith.constant 0 : i32
    %c0_i32_0 = arith.constant 0 : i32
    %c0_i32_1 = arith.constant 0 : i32
    return %c0_i32, %c0_i32_0 : i32, i32
  }
  func.func @transform_2(%arg0: i32) -> (i32, i32) {
    %c0_i32 = arith.constant 0 : i32
    %c0_i32_0 = arith.constant 0 : i32
    %c0_i32_1 = arith.constant 0 : i32
    return %c0_i32, %c0_i32_0 : i32, i32
  }
  func.func @transform_3(%arg0: i32) -> (i32, i32) {
    %c0_i32 = arith.constant 0 : i32
    %c0_i32_0 = arith.constant 0 : i32
    %c0_i32_1 = arith.constant 0 : i32
    return %c0_i32, %c0_i32_0 : i32, i32
  }
  func.func @transform_4(%arg0: i32) -> (i32, i32) {
    %c0_i32 = arith.constant 0 : i32
    %c0_i32_0 = arith.constant 0 : i32
    %c0_i32_1 = arith.constant 0 : i32
    return %c0_i32, %c0_i32_0 : i32, i32
  }
  func.func @transform_5(%arg0: i32) -> (i32, i32) {
    %c0_i32 = arith.constant 0 : i32
    %c0_i32_0 = arith.constant 0 : i32
    return %arg0, %c0_i32 : i32, i32
  }
}

</mosaic_0001>

<bundles_post_ra>
// kernel: tpu_custom_call.1
= control target key start
LH: loop header
LB: loop body
LE: loop exit
PB: predicated region body
PF: predicated region fallthrough
CT: control target
= control target key end

     0   :  { %10 = vsyncpa [#allocation3], 0  ;;  %s1084_s0 = inlined_call_operand.hbm [shape: f32[32,256], index: 0, kind: input, shape index: {}]   ;;  %s1085_s1 = inlined_call_operand.hbm [shape: f32[256,128], index: 1, kind: input, shape index: {}]   ;;  %s1086_s2 = inlined_call_operand.vmem [shape: f32[1,128], index: 2, kind: input, shape index: {}]   ;;  %s1087_s3 = inlined_call_operand.vmem [shape: f32[1,128], index: 3, kind: input, shape index: {}]   ;;  %s1088_s4 = inlined_call_operand.vmem [shape: f32[1,128], index: 4, kind: input, shape index: {}]   ;;  %s1089_s5 = inlined_call_operand.hbm [shape: f32[32,128], index: 5, kind: output, shape index: {}]  }
   0x1   :  { %12 = vsyncpa [#allocation3 + $0x1], 0 }
   0x2   :  { %13 = vsyncpa [#allocation6], 0 }
   0x3   :  { %14 = vsyncpa [#allocation4], 0 }
   0x4   :  { %16 = vsyncpa [#allocation4 + $0x1], 0  ;;  %s867_s18 = smov 0   ;;  %s869_s19 = smov 0  }
   0x5   :  { %s871_s20 = smov 0   ;;  %s873_s21 = smov 0  }
   0x6 LB: > { %s888_s22 = sadd.s32 4294967295, %s826_s21   ;;  %s522_s23 = sadd.s32 4294967294, %s826_s21   ;;  %s826_s21 = sphi %s873_s21, %s1109_s21   ;;  %s822_s20 = sphi %s871_s20, %s1108_s20   ;;  %s818_s19 = sphi %s869_s19, %s1107_s19   ;;  %s814_s18 = sphi %s867_s18, %s1106_s18  }
   0x7   : > { %p42_p0 = scmp.ne.s32.totalorder %s818_s19, %s814_s18  ;;  %p1090_p1 = scmp.eq.s32.totalorder %s888_s22, 0 }
   0x8   : > { %p156_p3 = scmp.eq.s32.totalorder %s522_s23, 1  ;;  %p523_p5 = scmp.ge.s32.totalorder %s826_s21, 1 }
   0x9   : > { %p897_p4 = por %p1090_p1, %p42_p0  ;;  %p163_p7 = scmp.lt.s32.totalorder %s826_s21, 3 }
   0xa   : > { %p902_p6 = por %p156_p3, %p42_p0  ;;  %s828_s27 = smov [#allocation5]  }
   0xb   : > { %s1093_s24 = scalar_select %p897_p4, 1, 0 }
   0xc   : > { %s1094_s25 = scalar_select %p902_p6, 1, 0 }
   0xd   : > { %p907_p8 = pnand %p523_p5, %p163_p7  ;;  %s175_s28 = sshll.u32 %s828_s27, 4  ;;  %s911_s28 = int_to_ptr.vmem [resolvable:$true] %s175_s28 }
   0xe   : > { %s923_s30 = sadd.s32 1, %s826_s21   ;;  %s29_s6 = sadd.s32 1, %s822_s20 }
   0xf   : > { %s1095_s26 = scalar_select %p907_p8, 1, 0 }
  0x10   : > { %p639_p9 = pneg %p907_p8  ;;  %s26_s7 = ssub.s32 %s826_s21, %s923_s30 }
  0x11   : > { %s698_s10 = scalar_lea.hbm %s1085_s1, 4096 }
  0x12   : > { %p918_p11 = pnand %p639_p9, %p1090_p1  ;;  %p699_p12 = scmp.ne.s32.totalorder %s1085_s1, %s698_s10 }
  0x13   : > { %p705_p5 = scmp.lt.u32.totalorder %s698_s10, %s1085_s1 }
  0x14   : > { %p700_p13 = pneg %p918_p11 }
  0x16   : > { %p701_p0 = pnand %p700_p13, %p699_p12 }
  0x18   : > { %p702_p3 = pneg %p701_p0 }
  0x1a   : > { %p707_p7 = pnand %p705_p5, %p702_p3 }
  0x1c   : > { %710 = shalt.err (!%p707_p7)
}
  0x1d   : > { %s711_s15 = scalar_lea.vmem %s911_s28, 4096  ;;  %p719_p2 = scmp.lt.s32.totalorder %s911_s28, %s911_s28 }
  0x1e   : > { %p712_p9 = scmp.ne.s32.totalorder %s911_s28, %s711_s15  ;;  %p720_p6 = scmp.lt.s32.totalorder %s711_s15, %s711_s15 }
  0x20   : > { %p714_p10 = pnand %p712_p9, %p700_p13  ;;  %p721_p4 = por %p720_p6, %p719_p2 }
  0x22   : > { %p715_p1 = pneg %p714_p10 }
  0x24   : > { %p722_p8 = pnand %p721_p4, %p715_p1 }
  0x26   : > { %725 = shalt.err (!%p722_p8)
}
  0x27   : > { %s829_s16 = smov 128   ;;  %s830_s17 = smov 8  }
  0x28   : > { %642 = dma.hbm_to_vmem [thread:$0]  (!%p918_p11), %s1085_s1, 4096, %s911_s28, [#allocation6], %s829_s16, %s829_s16, %s830_s17  }
  0x29   : > { %p27_p2 = scmp.eq.s32.totalorder %s26_s7, 0  ;;  %p36_p1 = scmp.ne.s32.totalorder %s822_s20, %s818_s19 }
  0x2a   : > { %p37_p4 = scmp.eq.s32.totalorder %s826_s21, 0  ;;  %p652_p6 = scmp.lt.s32.totalorder %s826_s21, 2 }
  0x2b   : > { %s954_s8 = scalar_select %p27_p2, %s822_s20, %s29_s6  }
  0x2c   : > { %p38_p8 = por %p37_p4, %p36_p1  ;;  %p1097_p10 = scmp.eq.s32.totalorder %s888_s22, 1 }
  0x2d   : > { %s198_s10 = sand.u32 1, %s822_s20   ;;  %s543_s11 = sshll.u32 %s826_s21, 9 }
  0x2e   : > { %p958_p12 = por %p1097_p10, %p36_p1  ;;  %s526_s12 = sshll.u32 %s198_s10, 5 }
  0x2f   : > { %s967_s14 = scalar_lea.hbm %s1084_s0, %s543_s11  ;;  %s202_s28 = scalar_lea.vmem [#allocation2], %s526_s12 }
  0x30   : > { %s210_s6 = sshll.u32 %s202_s28, 4  ;;  %p969_p11 = pnand %p652_p6, %p38_p8  ;;  %s973_s6 = int_to_ptr.vmem [resolvable:$true] %s210_s6 }
  0x31   : > { %s975_s15 = scalar_lea.sflag [#allocation3], %s198_s10  ;;  %s726_s16 = scalar_lea.hbm %s967_s14, 512 }
  0x32   : > { %p727_p13 = scmp.ne.s32.totalorder %s967_s14, %s726_s16  ;;  %p728_p0 = pneg %p969_p11 }
  0x33   : > { %s731_s27 = scalar_lea.hbm %s1084_s0, 1024  ;;  %p732_p7 = scmp.lt.u32.totalorder %s967_s14, %s1084_s0 }
  0x34   : > { %p729_p3 = pnand %p728_p0, %p727_p13  ;;  %p733_p9 = scmp.lt.u32.totalorder %s731_s27, %s726_s16 }
  0x35   : > { %p735_p1 = scmp.lt.u32.totalorder %s726_s16, %s967_s14 }
  0x36   : > { %p730_p5 = pneg %p729_p3  ;;  %p734_p2 = por %p733_p9, %p732_p7 }
  0x38   : > { %p736_p4 = por %p735_p1, %p734_p2 }
  0x3a   : > { %p737_p6 = pnand %p736_p4, %p730_p5 }
  0x3c   : > { %740 = shalt.err (!%p737_p6)
}
  0x3d   : > { %s741_s10 = scalar_lea.vmem %s973_s6, 512  ;;  %s831_s29 = smov [#allocation2]  }
  0x3e   : > { %p742_p8 = scmp.ne.s32.totalorder %s973_s6, %s741_s10  ;;  %s746_s13 = sshll.u32 %s831_s29, 4  ;;  %s747_s13 = int_to_ptr.vmem [resolvable:$false] %s746_s13 }
  0x3f   : > { %s748_s28 = scalar_lea.vmem %s747_s13, 1024  ;;  %p749_p3 = scmp.lt.s32.totalorder %s973_s6, %s747_s13 }
  0x40   : > { %p744_p10 = pnand %p742_p8, %p728_p0  ;;  %p750_p7 = scmp.lt.s32.totalorder %s748_s28, %s741_s10 }
  0x42   : > { %p745_p13 = pneg %p744_p10  ;;  %p751_p9 = por %p750_p7, %p749_p3 }
  0x44   : > { %p752_p2 = pnand %p751_p9, %p745_p13 }
  0x46   : > { %755 = shalt.err (!%p752_p2)
}
  0x47   : > { %s832_s16 = smov 256   ;;  %s833_s17 = smov 16  }
  0x48   : > { %646 = dma.hbm_to_vmem [thread:$0]  (!%p969_p11), %s967_s14, 512, %s973_s6, %s975_s15, %s832_s16, %s832_s16, %s833_s17  }
  0x49   : > { %p1100_p0 = scmp.ne.s32.totalorder %s1095_s26, 0 }
  0x4a   : > { %s1006_s23 = sand.u32 (!%p1100_p0), 1, %s818_s19   ;;  %p1101_p5 = scmp.ne.s32.totalorder (!%p1100_p0), %s1093_s24, 0 }
  0x4b   : > { %222 = sbr.rel (%p1100_p0) target bundleno = 524 (0x20c), region = 40  ;;  %s531_s27 = sshll.u32 (!%p1100_p0), %s1006_s23, 5 }
  0x4c   : > { %s225_s11 = scalar_lea.sflag (!%p1100_p0), [#allocation3], %s1006_s23  ;;  %s1010_s12 = scalar_lea.vmem (!%p1100_p0), [#allocation2], %s531_s27 }
  0x52   : > { %801 = dma.done.wait (%p1101_p5), %s225_s11, 512  }
  0x53   : > { %803 = vsyncadd (%p1101_p5), %s225_s11, 4294966784  ;;  %p1102_p11 = scmp.eq.s32.totalorder %s888_s22, 0 }
  0x55   : > { %805 = dma.done.wait (%p1102_p11), [#allocation6], 4096   ;;  %p1103_p1 = pmov %p1102_p11 }
  0x56   : > { %v281_v0 = vld [vmem:[#allocation5 + $0x80] sm:$0xff]  ;;  %v282_v1 = vld [vmem:[#allocation5 + $0x88] sm:$0xff]  ;;  %v283_v5 = vld [vmem:[#allocation5 + $0x90] sm:$0xff]  ;;  %s533_s7 = sshll.u32 %s1006_s23, 4  ;;  %s544_s29 = sshll.u32 %s888_s22, 8 }
  0x57   : > { %807 = vsyncadd (%p1103_p1), [#allocation6], 4294963200  ;;  %v265_v2 = vld [vmem:[#allocation5] sm:$0xff]  ;;  %v583_v3 = vpack.c.bf16 %v282_v1, %v281_v0  ;;  %v266_v4 = vld [vmem:[#allocation5 + $0x8] sm:$0xff]  ;;  %s258_s13 = scalar_lea.vmem [#allocation7], %s533_s7  ;;  %s1038_s27 = scalar_lea.hbm %s1089_s5, %s544_s29 }
  0x58   : > { %v284_v6 = vld [vmem:[#allocation5 + $0x98] sm:$0xff]  ;;  %v585_v7 = vpack.c.bf16 %v266_v4, %v265_v2  ;;  %v267_v9 = vld [vmem:[#allocation5 + $0x10] sm:$0xff]  ;;  %v285_v11 = vld [vmem:[#allocation5 + $0xa0] sm:$0xff]  ;;  %s439_s28 = sshll.u32 %s258_s13, 4  ;;  %s426_s11 = scalar_lea.sflag [#allocation4], %s1006_s23  ;;  %s1040_s28 = int_to_ptr.vmem [resolvable:$true] %s439_s28 }
  0x59   : > { %v587_v8 = vpack.c.bf16 %v284_v6, %v283_v5  ;;  %v268_v10 = vld [vmem:[#allocation5 + $0x18] sm:$0xff]  ;;  %584 = vmatprep.subr.bf16.mxu0 %v583_v3  ;;  %615 = vmatprep.subr.bf16.mxu1 %v583_v3  ;;  %v286_v12 = vld [vmem:[#allocation5 + $0xa8] sm:$0xff]  ;;  %v269_v15 = vld [vmem:[#allocation5 + $0x20] sm:$0xff]  ;;  %s834_s22 = smov [#allocation7]  }
  0x5a   : > { %586 = vmatpush3.bf16.msra.mxu0 %v585_v7  ;;  %623 = vmatpush3.bf16.msra.mxu1 %v585_v7  ;;  %v589_v13 = vpack.c.bf16 %v268_v10, %v267_v9  ;;  %v591_v14 = vpack.c.bf16 %v286_v12, %v285_v11  ;;  %v270_v16 = vld [vmem:[#allocation5 + $0x28] sm:$0xff]  ;;  %v287_v17 = vld [vmem:[#allocation5 + $0xb0] sm:$0xff]  ;;  %v288_v18 = vld [vmem:[#allocation5 + $0xb8] sm:$0xff]  ;;  %s760_s24 = sshll.u32 %s834_s22, 4  ;;  %s761_s24 = int_to_ptr.vmem [resolvable:$false] %s760_s24 }
  0x5b   : > { %588 = vmatprep.subr.bf16.mxu0 %v587_v8  ;;  %616 = vmatprep.subr.bf16.mxu1 %v587_v8  ;;  %v593_v19 = vpack.c.bf16 %v270_v16, %v269_v15  ;;  %v595_v20 = vpack.c.bf16 %v288_v18, %v287_v17  ;;  %v271_v21 = vld [vmem:[#allocation5 + $0x30] sm:$0xff]  ;;  %v272_v22 = vld [vmem:[#allocation5 + $0x38] sm:$0xff]  ;;  %v289_v23 = vld [vmem:[#allocation5 + $0xc0] sm:$0xff]  ;;  %s762_s26 = scalar_lea.vmem %s761_s24, 512  ;;  %p763_p10 = scmp.lt.s32.totalorder %s1040_s28, %s761_s24 }
  0x5c   : > { %v290_v24 = vld [vmem:[#allocation5 + $0xc8] sm:$0xff]  ;;  %v264_v26 = vld [vmem:[%s1010_s12 + $0x18] sm:$0xff]  ;;  %v597_v27 = vpack.c.bf16 %v272_v22, %v271_v21  ;;  %v273_v29 = vld [vmem:[#allocation5 + $0x40] sm:$0xff] }
  0x5d   : > { %v262_v25 = vld [vmem:[%s1010_s12 + $0x8] sm:$0xff]  ;;  %v599_v28 = vpack.c.bf16 %v290_v24, %v289_v23  ;;  %v291_v31 = vld [vmem:[#allocation5 + $0xd0] sm:$0xff]  ;;  %v292_v32 = vld [vmem:[#allocation5 + $0xd8] sm:$0xff]  ;;  %373 = vmatprep.mubr.f32.mxu1 %v264_v26 }
  0x5e   : > { %590 = vmatpush3.bf16.msra.mxu0 %v589_v13  ;;  %624 = vmatpush3.bf16.msra.mxu1 %v589_v13  ;;  %v274_v30 = vld [vmem:[#allocation5 + $0x48] sm:$0xff]  ;;  %v603_v34 = vpack.c.bf16 %v292_v32, %v291_v31  ;;  %v275_v35 = vld [vmem:[#allocation5 + $0x50] sm:$0xff]  ;;  %v276_v36 = vld [vmem:[#allocation5 + $0x58] sm:$0xff] }
  0x5f   : > { %592 = vmatprep.subr.bf16.mxu0 %v591_v14  ;;  %617 = vmatprep.subr.bf16.mxu1 %v591_v14  ;;  %v601_v33 = vpack.c.bf16 %v274_v30, %v273_v29  ;;  %v293_v37 = vld [vmem:[#allocation5 + $0xe0] sm:$0xff]  ;;  %v294_v38 = vld [vmem:[#allocation5 + $0xe8] sm:$0xff]  ;;  %v605_v39 = vpack.c.bf16 %v276_v36, %v275_v35  ;;  %v295_v43 = vld [vmem:[#allocation5 + $0xf0] sm:$0xff] }
  0x60   : > { %368 = vmatprep.mubr.f32.mxu0 %v262_v25  ;;  %v607_v40 = vpack.c.bf16 %v294_v38, %v293_v37  ;;  %v277_v41 = vld [vmem:[#allocation5 + $0x60] sm:$0xff]  ;;  %v278_v42 = vld [vmem:[#allocation5 + $0x68] sm:$0xff]  ;;  %v296_v44 = vld [vmem:[#allocation5 + $0xf8] sm:$0xff] }
  0x61   : > { %v609_v45 = vpack.c.bf16 %v278_v42, %v277_v41  ;;  %v611_v46 = vpack.c.bf16 %v296_v44, %v295_v43  ;;  %v279_v47 = vld [vmem:[#allocation5 + $0x70] sm:$0xff]  ;;  %v280_v48 = vld [vmem:[#allocation5 + $0x78] sm:$0xff]  ;;  %v261_v50 = vld [vmem:[%s1010_s12] sm:$0xff] }
  0x62   : > { %594 = vmatpush3.bf16.msra.mxu0 %v593_v19  ;;  %625 = vmatpush3.bf16.msra.mxu1 %v593_v19  ;;  %v613_v49 = vpack.c.bf16 %v280_v48, %v279_v47  ;;  %v263_v51 = vld [vmem:[%s1010_s12 + $0x10] sm:$0xff]  ;;  %v534_v54 = vld [vmem:[%s1086_s2] ss:$0 sm:$0xff]  ;;  %s756_s12 = scalar_lea.vmem %s1040_s28, 256 }
  0x63   : > { %596 = vmatprep.subr.bf16.mxu0 %v595_v20  ;;  %618 = vmatprep.subr.bf16.mxu1 %v595_v20  ;;  %v535_v15 = vld [vmem:[%s1087_s3] ss:$0 sm:$0xff]  ;;  %p757_p4 = scmp.ne.s32.totalorder %s1040_s28, %s756_s12  ;;  %p764_p13 = scmp.lt.s32.totalorder %s762_s26, %s756_s12 }
  0x64   : > { %v536_v17 = vld [vmem:[%s1088_s4] ss:$0 sm:$0xff] }
  0x65   : > { %p758_p6 = pnand %p757_p4, %p958_p12  ;;  %p765_p3 = por %p764_p13, %p763_p10 }
  0x66   : > { %598 = vmatpush3.bf16.msra.mxu0 %v597_v27  ;;  %626 = vmatpush3.bf16.msra.mxu1 %v597_v27 }
  0x67   : > { %600 = vmatprep.subr.bf16.mxu0 %v599_v28  ;;  %619 = vmatprep.subr.bf16.mxu1 %v599_v28  ;;  %p759_p8 = pneg %p758_p6 }
  0x69   : > { %p766_p7 = pnand %p765_p3, %p759_p8 }
  0x6a   : > { %602 = vmatpush3.bf16.msra.mxu0 %v601_v33  ;;  %627 = vmatpush3.bf16.msra.mxu1 %v601_v33 }
  0x6b   : > { %604 = vmatprep.subr.bf16.mxu0 %v603_v34  ;;  %620 = vmatprep.subr.bf16.mxu1 %v603_v34 }
  0x6e   : > { %606 = vmatpush3.bf16.msra.mxu0 %v605_v39  ;;  %628 = vmatpush3.bf16.msra.mxu1 %v605_v39 }
  0x6f   : > { %608 = vmatprep.subr.bf16.mxu0 %v607_v40  ;;  %621 = vmatprep.subr.bf16.mxu1 %v607_v40 }
  0x72   : > { %610 = vmatpush3.bf16.msra.mxu0 %v609_v45  ;;  %629 = vmatpush3.bf16.msra.mxu1 %v609_v45 }
  0x73   : > { %612 = vmatprep.subr.bf16.mxu0 %v611_v46  ;;  %622 = vmatprep.subr.bf16.mxu1 %v611_v46 }
  0x76   : > { %614 = vmatpush3.bf16.msra.mxu0 %v613_v49  ;;  %630 = vmatpush3.bf16.msra.mxu1 %v613_v49 }
  0x79   : > { %369 = vmatmul.mubr.f32.vlgmr.msra.gmra.mrb[0].mxu0 %v261_v50  ;;  %374 = vmatmul.mubr.f32.vlgmr.msra.gmra.mrb[0].mxu1 %v263_v51 }
 0x14c   : > { %v577_v52 = vpop.f32.mrb[0].mxu0  ;;  %v580_v53 = vpop.f32.mrb[0].mxu1 }
 0x14d   : > { %v578_v55 = vpop.f32.mrb[1].mxu0  ;;  %v581_v56 = vpop.f32.mrb[1].mxu1 }
 0x14e   : > { %v579_v57 = vadd.f32 %v578_v55, %v577_v52  ;;  %v582_v58 = vadd.f32 %v581_v56, %v580_v53 }
 0x150   : > { %v371_v59 = vadd.f32 %v579_v57, %v534_v54  ;;  %v376_v60 = vadd.f32 %v582_v58, %v534_v54 }
 0x152   : > { %379 = vadd.xlane.f32.xlu0 %v371_v59  ;;  %v383_v61 = vmul.f32 %v371_v59, %v371_v59  ;;  %v384_v62 = vmul.f32 %v376_v60, %v376_v60 }
 0x154   : > { %385 = vadd.xlane.f32.xlu1 %v383_v61 }
 0x156   : > { %381 = vadd.xlane.f32.xlu0 %v376_v60 }
 0x158   : > { %387 = vadd.xlane.f32.xlu1 %v384_v62 }
 0x1df   : > { %v380_v63 = vpop.xlane.xlu0 %379 }
 0x1e0   : > { %v389_v0 = vmul.f32 0.03125, %v380_v63 }
 0x1e1   : > { %v386_v1 = vpop.xlane.xlu1 %385 }
 0x1e2   : > { %v393_v2 = vmul.f32 %v389_v0, %v389_v0  ;;  %v391_v3 = vmul.f32 0.03125, %v386_v1  ;;  %v397_v13 = vsub.f32 %v371_v59, %v389_v0 }
 0x1e3   : > { %v382_v4 = vpop.xlane.xlu0 %381 }
 0x1e4   : > { %v395_v5 = vsub.f32 %v391_v3, %v393_v2  ;;  %v390_v6 = vmul.f32 0.03125, %v382_v4 }
 0x1e5   : > { %v388_v7 = vpop.xlane.xlu1 %387 }
 0x1e6   : > { %v399_v8 = vadd.f32 1e-05, %v395_v5  ;;  %v394_v9 = vmul.f32 %v390_v6, %v390_v6  ;;  %v392_v10 = vmul.f32 0.03125, %v388_v7  ;;  %v398_v19 = vsub.f32 %v376_v60, %v390_v6 }
 0x1e8   : > { %694 = vrsqrt.f32 %v399_v8  ;;  %v396_v11 = vsub.f32 %v392_v10, %v394_v9 }
 0x1ea   : > { %v400_v12 = vadd.f32 1e-05, %v396_v11 }
 0x1ec   : > { %696 = vrsqrt.f32 %v400_v12 }
 0x1f2   : > { %v695_v14 = vpop.eup %694 }
 0x1f3   : > { %v403_v16 = vmul.f32 %v695_v14, %v397_v13 }
 0x1f5   : > { %v412_v18 = vmul.f32 %v535_v15, %v403_v16 }
 0x1f6   : > { %v697_v20 = vpop.eup %696 }
 0x1f7   : > { %v421_v21 = vadd.f32 %v536_v17, %v412_v18  ;;  %v404_v22 = vmul.f32 %v697_v20, %v398_v19 }
 0x1f9   : > { %v413_v23 = vmul.f32 %v535_v15, %v404_v22  ;;  %423 = vst [vmem:[%s258_s13] sm:$0xff] %v421_v21 }
 0x1fb   : > { %v422_v24 = vadd.f32 %v536_v17, %v413_v23 }
 0x1fd   : > { %424 = vst [vmem:[%s258_s13 + $0x8] sm:$0xff] %v422_v24 }
 0x1fe   : > { %769 = shalt.err (!%p766_p7)
}
 0x1ff   : > { %s770_s14 = scalar_lea.hbm %s1038_s27, 256  ;;  %s774_s15 = scalar_lea.hbm %s1089_s5, 512 }
 0x200   : > { %p771_p9 = scmp.ne.s32.totalorder %s1038_s27, %s770_s14  ;;  %p775_p5 = scmp.lt.u32.totalorder %s1038_s27, %s1089_s5 }
 0x201   : > { %p776_p11 = scmp.lt.u32.totalorder %s774_s15, %s770_s14  ;;  %p778_p4 = scmp.lt.u32.totalorder %s770_s14, %s1038_s27 }
 0x202   : > { %p772_p2 = pnand %p771_p9, %p958_p12 }
 0x203   : > { %p777_p1 = por %p776_p11, %p775_p5 }
 0x204   : > { %p773_p0 = pneg %p772_p2 }
 0x205   : > { %p779_p6 = por %p778_p4, %p777_p1 }
 0x207   : > { %p780_p8 = pnand %p779_p6, %p773_p0 }
 0x209   : > { %783 = shalt.err (!%p780_p8)
}
 0x20a   : > { %s835_s13 = smov 128   ;;  %s836_s16 = smov 8  }
 0x20b   : > { %637 = dma.vmem_to_hbm [thread:$0]  (%p958_p12), %s1040_s28, 256, %s1038_s27, %s426_s11, %s835_s13, %s835_s13, %s836_s16  }
 0x20c PF: > { %s454_s17 = sand.u32 1, %s814_s18   ;;  %p1104_p10 = scmp.ne.s32.totalorder %s1094_s25, 0 }
 0x20d   : > { %p1105_p13 = scmp.ge.s32.totalorder %s826_s21, 2  ;;  %s455_s12 = scalar_lea.sflag [#allocation4], %s454_s17 }
 0x20f   : > { %p648_p3 = pnand %p1105_p13, %p1104_p10 }
 0x211   : > { %809 = dma.done.wait (!%p648_p3), %s455_s12, 256  }
 0x212   : > { %811 = vsyncadd (!%p648_p3), %s455_s12, 4294967040  ;;  %p19_p7 = scmp.ge.s32.totalorder %s923_s30, 4   ;;  %s1106_s18 = smov %s818_s19 }
 0x213   : > { %s1107_s19 = smov %s822_s20  ;;  %s1108_s20 = smov %s954_s8 }
 0x214   : > { %s1109_s21 = smov %s923_s30  ;;  %21 = sbr.rel (!%p19_p7) target bundleno = 6 (0x6), region = 89 }
 0x21b   :  { %460 = vsyncpa [#allocation3], 1 }
 0x21c   :  { %462 = vsyncpa [#allocation3 + $0x1], 1 }
 0x21d   :  { %463 = vsyncpa [#allocation6], 1 }
 0x21e   :  { %464 = vsyncpa [#allocation4], 1 }
 0x21f   :  { %466 = vsyncpa [#allocation4 + $0x1], 1 }

</bundles_post_ra>
